<compile_context>
chip_gen: v7x
topology: tpu7x:2x2x1
jax: 0.10.0
libtpu: 0.0.40
codegen_flags: <defaults>
</compile_context>

<pallas_src>
import math

import jax
import jax.numpy as jnp
from jax import lax
from jax.experimental import pallas as pl
from jax.experimental.pallas import tpu as pltpu


# ---------------------------------------------------------------------------
# Kernels: lane-dense identity copies.  The flatten itself is a free
# wrapper-side reshape; the kernel only streams bytes HBM -> HBM through
# (sublane, lane)-aligned tiles (unmasked vld/vst, large contiguous DMAs).
# ---------------------------------------------------------------------------

def _copy1_kernel(x_ref, o_ref):
    o_ref[...] = x_ref[...]


def _copy2_kernel(r_ref, i_ref, or_ref, oi_ref):
    # Real + imaginary planes of a complex tensor in ONE pallas_call
    # (2 inputs, 2 outputs): no wrapper interleave / de-interleave passes.
    or_ref[...] = r_ref[...]
    oi_ref[...] = i_ref[...]


# ---------------------------------------------------------------------------
# Tiling helpers.
# ---------------------------------------------------------------------------

# Total live VMEM target: streams x 2 pipeline buffers x block_bytes stays
# under this on every generation (v5e 16 MiB scoped default, v6e 32 MiB,
# v7x 32 MiB scoped / 64 MiB physical per TC).
_TOTAL_LIVE_VMEM_BUDGET = 12 << 20   # bytes
_VMEM_LIMIT_BYTES = 32 << 20         # explicit scoped-VMEM limit, safe on all gens
_LANE_CAP = 4096                     # max lanes per block
_SUBLANE_CAP = 1024                  # max sublanes per block


def _sublane_unit(dtype) -> int:
    """Minimum sublane multiple for fully-packed vregs (dtype-aware)."""
    itemsize = jnp.dtype(dtype).itemsize
    if itemsize >= 4:
        return 8
    if itemsize == 2:
        return 16
    return 32


def _dense_2d(total: int, rows_hint: int, cols_hint: int):
    """Pick a lane/sublane-dense slab (rows, cols) with rows*cols == total.

    cols is a multiple of 128 and rows >= 8 when such a factorization exists,
    so vregs/DMAs are dense even for tiny batch sizes.  Falls back to the
    original (rows_hint, cols_hint) shape otherwise (cdiv tiling + edge
    masking handles that case).
    """
    best = None
    cols = (min(_LANE_CAP, total) // 128) * 128
    while cols >= 128:
        if total % cols == 0:
            rows = total // cols
            if rows >= 8:
                return rows, cols
            if best is None:
                best = (rows, cols)
        cols -= 128
    if best is not None:
        return best
    return rows_hint, cols_hint


def _tile_sizes(rows: int, cols: int, dtype, num_streams: int):
    """Choose (tn, tf): lane-dense, sublane-aligned, VMEM-budget bounded."""
    itemsize = jnp.dtype(dtype).itemsize
    max_block_bytes = _TOTAL_LIVE_VMEM_BUDGET // (num_streams * 2)
    max_block_elems = max(max_block_bytes // itemsize, 8 * 128)

    # Lane axis: multiple of 128, or the full extent when cols < 128.
    if cols < 128:
        tf = cols
    else:
        tf = min((cols // 128) * 128, _LANE_CAP)

    # Sublane axis: dtype-aware unit, capped by the per-block element budget.
    unit = _sublane_unit(dtype)
    if rows < unit:
        tn = rows
    else:
        tn_budget = max(max_block_elems // max(tf, 1), unit)
        tn = min((tn_budget // unit) * unit, (rows // unit) * unit, _SUBLANE_CAP)
        tn = max(tn, unit)
    return tn, tf


def _flat_copy(a: jax.Array) -> jax.Array:
    """Tiled identity copy of a 2-D array through a Pallas kernel."""
    rows, cols = a.shape
    tn, tf = _tile_sizes(rows, cols, a.dtype, num_streams=2)
    grid = (pl.cdiv(rows, tn), pl.cdiv(cols, tf))
    spec = pl.BlockSpec((tn, tf), lambda i, j: (i, j))
    return pl.pallas_call(
        _copy1_kernel,
        out_shape=jax.ShapeDtypeStruct((rows, cols), a.dtype),
        grid_spec=pltpu.PrefetchScalarGridSpec(
            num_scalar_prefetch=0,
            grid=grid,
            in_specs=[spec],
            out_specs=spec,
        ),
        compiler_params=pltpu.CompilerParams(
            dimension_semantics=("parallel", "parallel"),
            vmem_limit_bytes=_VMEM_LIMIT_BYTES,
        ),
    )(a)


def _flat_copy2(r: jax.Array, i: jax.Array):
    """Tiled identity copy of two same-shape 2-D planes in ONE pallas_call."""
    rows, cols = r.shape
    tn, tf = _tile_sizes(rows, cols, r.dtype, num_streams=4)
    grid = (pl.cdiv(rows, tn), pl.cdiv(cols, tf))
    spec = pl.BlockSpec((tn, tf), lambda gi, gj: (gi, gj))
    shape = jax.ShapeDtypeStruct((rows, cols), r.dtype)
    return pl.pallas_call(
        _copy2_kernel,
        out_shape=(shape, shape),
        grid_spec=pltpu.PrefetchScalarGridSpec(
            num_scalar_prefetch=0,
            grid=grid,
            in_specs=[spec, spec],
            out_specs=(spec, spec),
        ),
        compiler_params=pltpu.CompilerParams(
            dimension_semantics=("parallel", "parallel"),
            vmem_limit_bytes=_VMEM_LIMIT_BYTES,
        ),
    )(r, i)


def complex_flatten(x: jax.Array) -> jax.Array:
    """Pallas implementation of Complex_Flatten.forward (nn.Flatten())."""
    assert x.ndim >= 2, "Flatten expects at least 2 dims (batch + features)"
    n = x.shape[0]
    flat = math.prod(x.shape[1:])
    total = n * flat

    if jnp.iscomplexobj(x):
        if x.dtype != jnp.complex64:
            # TODO(synk): complex128 would need f64 planes, which Mosaic does
            # not support; fall back to the (free) XLA reshape for that dtype.
            return x.reshape(n, flat)
        rows, cols = _dense_2d(total, n, flat)
        r = jnp.real(x).reshape(rows, cols)
        i = jnp.imag(x).reshape(rows, cols)
        out_r, out_i = _flat_copy2(r, i)
        return lax.complex(out_r.reshape(n, flat), out_i.reshape(n, flat))

    if jnp.dtype(x.dtype).itemsize > 4:
        # TODO(synk): f64 not supported by Mosaic; free reshape fallback.
        return x.reshape(n, flat)

    # Real fast path: one stream, reshaped to a dense slab for full vregs.
    rows, cols = _dense_2d(total, n, flat)
    return _flat_copy(x.reshape(rows, cols)).reshape(n, flat)


if __name__ == "__main__":
    key = jax.random.PRNGKey(0)
    kr, ki = jax.random.split(key)
    N, C, H, W = 2, 4, 16, 16
    x_real = jax.random.normal(kr, (N, C, H, W), dtype=jnp.float32)
    x_imag = jax.random.normal(ki, (N, C, H, W), dtype=jnp.float32)
    x = lax.complex(x_real, x_imag)  # complex64, shape (2, 4, 16, 16)

    out = complex_flatten(x)
    out = jax.block_until_ready(out)

    # Reference: plain reshape (what nn.Flatten does).
    ref = x.reshape(N, C * H * W)
    assert out.shape == (N, C * H * W), out.shape
    assert out.dtype == ref.dtype, (out.dtype, ref.dtype)
    assert bool(jnp.allclose(out, ref)), "complex mismatch vs reference flatten"

    # Also exercise the real-input fast path.
    out_r = jax.block_until_ready(complex_flatten(x_real))
    assert out_r.shape == (N, C * H * W), out_r.shape
    assert out_r.dtype == x_real.dtype
    assert bool(jnp.allclose(out_r, x_real.reshape(N, -1))), "real mismatch"

    print("KERNEL_OK")
</pallas_src>

<mosaic_0001>
module attributes {stable_mosaic.version = 11 : i64} {
  func.func @_copy2_kernel(%arg0: i32, %arg1: i32, %arg2: memref<8x256xf32, #tpu.memory_space<vmem>>, %arg3: memref<8x256xf32, #tpu.memory_space<vmem>>, %arg4: memref<8x256xf32, #tpu.memory_space<vmem>>, %arg5: memref<8x256xf32, #tpu.memory_space<vmem>>) attributes {dimension_semantics = [#tpu.dimension_semantics<parallel>, #tpu.dimension_semantics<parallel>], iteration_bounds = array<i64: 1, 1>, scalar_prefetch = 0 : i64, scratch_operands = 0 : i64, tpu.core_type = #tpu.core_type<tc>, window_params = [{transform_indices = @transform_0, window_bounds = array<i64: 8, 256>}, {transform_indices = @transform_1, window_bounds = array<i64: 8, 256>}, {transform_indices = @transform_2, window_bounds = array<i64: 8, 256>}, {transform_indices = @transform_3, window_bounds = array<i64: 8, 256>}]} {
    %c0 = arith.constant 0 : index
    %c0_0 = arith.constant 0 : index
    %0 = vector.load %arg2[%c0, %c0_0] : memref<8x256xf32, #tpu.memory_space<vmem>>, vector<8x256xf32>
    %c0_1 = arith.constant 0 : index
    %c0_2 = arith.constant 0 : index
    %1 = vector.load %arg4[%c0_1, %c0_2] : memref<8x256xf32, #tpu.memory_space<vmem>>, vector<8x256xf32>
    tpu.vector_store %arg4[%c0_1, %c0_2], %0 {strides = array<i32>} : memref<8x256xf32, #tpu.memory_space<vmem>>, vector<8x256xf32>,
    %c0_3 = arith.constant 0 : index
    %c0_4 = arith.constant 0 : index
    %2 = vector.load %arg3[%c0_3, %c0_4] : memref<8x256xf32, #tpu.memory_space<vmem>>, vector<8x256xf32>
    %c0_5 = arith.constant 0 : index
    %c0_6 = arith.constant 0 : index
    %3 = vector.load %arg5[%c0_5, %c0_6] : memref<8x256xf32, #tpu.memory_space<vmem>>, vector<8x256xf32>
    tpu.vector_store %arg5[%c0_5, %c0_6], %2 {strides = array<i32>} : memref<8x256xf32, #tpu.memory_space<vmem>>, vector<8x256xf32>,
    return
  }
  func.func @transform_0(%arg0: i32, %arg1: i32) -> (i32, i32) {
    %c0_i32 = arith.constant 0 : i32
    return %arg0, %arg1 : i32, i32
  }
  func.func @transform_1(%arg0: i32, %arg1: i32) -> (i32, i32) {
    %c0_i32 = arith.constant 0 : i32
    return %arg0, %arg1 : i32, i32
  }
  func.func @transform_2(%arg0: i32, %arg1: i32) -> (i32, i32) {
    %c0_i32 = arith.constant 0 : i32
    return %arg0, %arg1 : i32, i32
  }
  func.func @transform_3(%arg0: i32, %arg1: i32) -> (i32, i32) {
    %c0_i32 = arith.constant 0 : i32
    return %arg0, %arg1 : i32, i32
  }
}

</mosaic_0001>

<bundles_post_ra>
// kernel: tpu_custom_call.1
= control target key start
LH: loop header
LB: loop body
LE: loop exit
PB: predicated region body
PF: predicated region fallthrough
CT: control target
= control target key end

     0   :  { %9 = vsyncpa [#allocation3], 0  ;;  %s256_s0 = inlined_call_operand.hbm [shape: f32[8,256], index: 0, kind: input, shape index: {}]   ;;  %s257_s1 = inlined_call_operand.hbm [shape: f32[8,256], index: 1, kind: input, shape index: {}]   ;;  %s258_s2 = inlined_call_operand.hbm [shape: f32[8,256], index: 2, kind: output, shape index: {0}]   ;;  %s259_s3 = inlined_call_operand.hbm [shape: f32[8,256], index: 3, kind: output, shape index: {1}]  }
   0x1   :  { %10 = vsyncpa [#allocation6], 0 }
   0x2   :  { %11 = vsyncpa [#allocation4], 0 }
   0x3   :  { %12 = vsyncpa [#allocation9], 0  ;;  %s177_s12 = smov [#allocation2]   ;;  %s178_s14 = smov [#allocation5]  }
   0x4   :  { %s19_s13 = sshll.u32 %s177_s12, 4  ;;  %s29_s15 = sshll.u32 %s178_s14, 4  ;;  %s20_s13 = int_to_ptr.vmem [resolvable:$true] %s19_s13  ;;  %s30_s15 = int_to_ptr.vmem [resolvable:$true] %s29_s15 }
   0x5   :  { %s81_s18 = scalar_lea.hbm %s256_s0, 256 }
   0x6   :  { %p82_p0 = scmp.ne.s32.totalorder %s256_s0, %s81_s18  ;;  %p85_p1 = scmp.lt.u32.totalorder %s81_s18, %s256_s0 }
   0x8   :  { %p87_p2 = pnand %p85_p1, %p82_p0 }
   0xa   :  { %90 = shalt.err (!%p87_p2)
}
   0xb   :  { %s91_s23 = scalar_lea.vmem %s20_s13, 256  ;;  %p96_p4 = scmp.lt.s32.totalorder %s20_s13, %s20_s13 }
   0xc   :  { %p92_p3 = scmp.ne.s32.totalorder %s20_s13, %s91_s23  ;;  %p97_p5 = scmp.lt.s32.totalorder %s91_s23, %s91_s23 }
   0xe   :  { %p98_p6 = por %p97_p5, %p96_p4 }
  0x10   :  { %p99_p7 = pnand %p98_p6, %p92_p3 }
  0x12   :  { %102 = shalt.err (!%p99_p7)
}
  0x13   :  { %22 = dma.hbm_to_vmem [thread:$0]  %s256_s0, 256, %s20_s13, [#allocation3]  }
  0x14   :  { %s103_s28 = scalar_lea.hbm %s257_s1, 256 }
  0x15   :  { %p104_p8 = scmp.ne.s32.totalorder %s257_s1, %s103_s28  ;;  %p107_p9 = scmp.lt.u32.totalorder %s103_s28, %s257_s1 }
  0x17   :  { %p109_p10 = pnand %p107_p9, %p104_p8 }
  0x19   :  { %112 = shalt.err (!%p109_p10)
}
  0x1a   :  { %s113_s6 = scalar_lea.vmem %s30_s15, 256  ;;  %p118_p12 = scmp.lt.s32.totalorder %s30_s15, %s30_s15 }
  0x1b   :  { %p114_p11 = scmp.ne.s32.totalorder %s30_s15, %s113_s6  ;;  %p119_p13 = scmp.lt.s32.totalorder %s113_s6, %s113_s6 }
  0x1d   :  { %p120_p0 = por %p119_p13, %p118_p12 }
  0x1f   :  { %p121_p1 = pnand %p120_p0, %p114_p11 }
  0x21   :  { %124 = shalt.err (!%p121_p1)
}
  0x22   :  { %32 = dma.hbm_to_vmem [thread:$0]  %s257_s1, 256, %s30_s15, [#allocation6]  }
  0x23   :  { %169 = dma.done.wait [#allocation3], 256  }
  0x24   :  { %170 = vsyncadd [#allocation3], 4294967040 }
  0x25   :  { %171 = dma.done.wait [#allocation6], 256  }
  0x26   :  { %172 = vsyncadd [#allocation6], 4294967040  ;;  %s179_s8 = smov [#allocation7]   ;;  %s180_s10 = smov [#allocation8]   ;;  %v39_v0 = vld [vmem:[#allocation2] sm:$0xff]  ;;  %v40_v1 = vld [vmem:[#allocation2 + $0x8] sm:$0xff] }
  0x27   :  { %s53_s9 = sshll.u32 %s179_s8, 4  ;;  %s63_s11 = sshll.u32 %s180_s10, 4  ;;  %v43_v2 = vld [vmem:[#allocation5] sm:$0xff]  ;;  %41 = vst [vmem:[#allocation7] sm:$0xff] %v39_v0  ;;  %42 = vst [vmem:[#allocation7 + $0x8] sm:$0xff] %v40_v1  ;;  %v44_v3 = vld [vmem:[#allocation5 + $0x8] sm:$0xff]  ;;  %s54_s9 = int_to_ptr.vmem [resolvable:$true] %s53_s9  ;;  %s225_s11 = int_to_ptr.vmem [resolvable:$true] %s63_s11 }
  0x28   :  { %45 = vst [vmem:[#allocation8] sm:$0xff] %v43_v2  ;;  %46 = vst [vmem:[#allocation8 + $0x8] sm:$0xff] %v44_v3  ;;  %s125_s1 = scalar_lea.vmem %s54_s9, 256  ;;  %p130_p3 = scmp.lt.s32.totalorder %s54_s9, %s54_s9 }
  0x29   :  { %p126_p2 = scmp.ne.s32.totalorder %s54_s9, %s125_s1  ;;  %p131_p4 = scmp.lt.s32.totalorder %s125_s1, %s125_s1 }
  0x2b   :  { %p132_p5 = por %p131_p4, %p130_p3 }
  0x2d   :  { %p133_p6 = pnand %p132_p5, %p126_p2 }
  0x2f   :  { %136 = shalt.err (!%p133_p6)
}
  0x30   :  { %s137_s14 = scalar_lea.hbm %s258_s2, 256 }
  0x31   :  { %p138_p7 = scmp.ne.s32.totalorder %s258_s2, %s137_s14  ;;  %p141_p8 = scmp.lt.u32.totalorder %s137_s14, %s258_s2 }
  0x33   :  { %p143_p9 = pnand %p141_p8, %p138_p7 }
  0x35   :  { %146 = shalt.err (!%p143_p9)
}
  0x36   :  { %56 = dma.vmem_to_hbm [thread:$0]  %s54_s9, 256, %s258_s2, [#allocation4]  }
  0x37   :  { %s147_s21 = scalar_lea.vmem %s225_s11, 256  ;;  %p152_p11 = scmp.lt.s32.totalorder %s225_s11, %s225_s11 }
  0x38   :  { %p148_p10 = scmp.ne.s32.totalorder %s225_s11, %s147_s21  ;;  %p153_p12 = scmp.lt.s32.totalorder %s147_s21, %s147_s21 }
  0x3a   :  { %p154_p13 = por %p153_p12, %p152_p11 }
  0x3c   :  { %p155_p0 = pnand %p154_p13, %p148_p10 }
  0x3e   :  { %158 = shalt.err (!%p155_p0)
}
  0x3f   :  { %s159_s24 = scalar_lea.hbm %s259_s3, 256 }
  0x40   :  { %p160_p1 = scmp.ne.s32.totalorder %s259_s3, %s159_s24  ;;  %p163_p2 = scmp.lt.u32.totalorder %s159_s24, %s259_s3 }
  0x42   :  { %p165_p3 = pnand %p163_p2, %p160_p1 }
  0x44   :  { %168 = shalt.err (!%p165_p3)
}
  0x45   :  { %66 = dma.vmem_to_hbm [thread:$0]  %s225_s11, 256, %s259_s3, [#allocation9]  }
  0x46   :  { %173 = dma.done.wait [#allocation4], 256  }
  0x47   :  { %174 = vsyncadd [#allocation4], 4294967040 }
  0x48   :  { %175 = dma.done.wait [#allocation9], 256  }
  0x49   :  { %176 = vsyncadd [#allocation9], 4294967040 }
  0x4a   :  { %73 = vsyncpa [#allocation3], 1 }
  0x4b   :  { %74 = vsyncpa [#allocation6], 1 }
  0x4c   :  { %75 = vsyncpa [#allocation4], 1 }
  0x4d   :  { %76 = vsyncpa [#allocation9], 1 }

</bundles_post_ra>
